<compile_context>
chip_gen: v6e
topology: v6e:2x2x1
jax: 0.10.0
libtpu: 0.0.40
codegen_flags: <defaults>
</compile_context>

<pallas_src>
import functools

import jax
import jax.numpy as jnp
from jax.experimental import pallas as pl
from jax.experimental.pallas import tpu as pltpu


_VMEM_SPEC = pl.BlockSpec(memory_space=pltpu.MemorySpace.VMEM)


# -----------------------------------------------------------------------------
# Fused Pallas kernel: full encoder + decoder recurrence in one call
# -----------------------------------------------------------------------------
def graph_rnn_kernel(a_ref, x_seq_ref,
                     enc_wx3_ref, enc_wh2_ref, enc_b3_ref, enc_wch_ref,
                     dec_wx3_ref, dec_wh2_ref, dec_b3_ref, dec_wch_ref,
                     wout_ref, bout_ref,
                     out_ref,
                     *, seq_len, num_layers, hidden_dim):
    """Runs seq_len encoder steps + seq_len decoder steps of num_layers GRU cells.

    Shapes (all f32, H = hidden_dim = out_feats, features padded to width H):
      a_ref        (N, N)          normalized adjacency
      x_seq_ref    (T, N, H)       input sequence, zero-padded to width H
      *_wx3_ref    (L, H, 3H)      fused [wrx|wux|wcx] per layer (zero rows past Fin)
      *_wh2_ref    (L, H, 2H)      fused [wrh|wuh]     per layer
      *_b3_ref     (L, 1, 3H)      fused [br|bu|bc]    per layer
      *_wch_ref    (L, H, H)       candidate-gate hidden weight
      wout_ref     (H, H)          output projection, zero cols past in_feats
      bout_ref     (1, H)
      out_ref      (T, N, H)       decoder outputs (padded; sliced outside)
    """
    f32 = jnp.float32
    H = hidden_dim
    n = a_ref.shape[0]
    a = a_ref[...]                                              # resident (N, N)

    def cell(x, h, wx3, wh2, b3, wch):
        # (A @ x) @ W == A @ (x @ W): share one adjacency matmul per path.
        pre = jnp.dot(x, wx3, preferred_element_type=f32)       # (N, 3H)
        hw = jnp.dot(h, wh2, preferred_element_type=f32)        # (N, 2H)
        ru = (jnp.dot(a, pre[:, 0:2 * H] + hw, preferred_element_type=f32)
              + b3[:, 0:2 * H])                                 # (N, 2H)
        r = jax.nn.sigmoid(ru[:, 0:H])
        u = jax.nn.sigmoid(ru[:, H:2 * H])
        cw = jnp.dot(r * h, wch, preferred_element_type=f32)    # (N, H)
        c = jnp.tanh(jnp.dot(a, pre[:, 2 * H:3 * H] + cw,
                             preferred_element_type=f32)
                     + b3[:, 2 * H:3 * H])                      # (N, H)
        return u * h + (1.0 - u) * c

    # ---- encoder: seq_len steps over the input sequence ----
    def enc_body(t, hidden):
        x = x_seq_ref[t]                                        # (N, H)
        new_hidden = []
        for layer in range(num_layers):                         # static, unrolled
            h_new = cell(x, hidden[layer],
                         enc_wx3_ref[layer], enc_wh2_ref[layer],
                         enc_b3_ref[layer], enc_wch_ref[layer])
            new_hidden.append(h_new)
            x = h_new
        return tuple(new_hidden)

    hidden0 = tuple(jnp.zeros((n, H), f32) for _ in range(num_layers))
    hidden = jax.lax.fori_loop(0, seq_len, enc_body, hidden0)

    # ---- decoder: feed own (projected) output back, seq_len steps ----
    w_out = wout_ref[...]                                       # (H, H)
    b_out = bout_ref[...]                                       # (1, H)

    def dec_body(t, carry):
        x, hidden = carry[0], carry[1:]
        new_hidden = []
        for layer in range(num_layers):                         # static, unrolled
            h_new = cell(x, hidden[layer],
                         dec_wx3_ref[layer], dec_wh2_ref[layer],
                         dec_b3_ref[layer], dec_wch_ref[layer])
            new_hidden.append(h_new)
            x = h_new
        y = jnp.dot(x, w_out, preferred_element_type=f32) + b_out   # (N, H), padded
        out_ref[t] = y
        return (y,) + tuple(new_hidden)                         # y is next dec input

    jax.lax.fori_loop(0, seq_len, dec_body,
                      (jnp.zeros((n, H), f32),) + hidden)


# -----------------------------------------------------------------------------
# Parameter packing: per-gate params -> layer-stacked fused weight blocks
# -----------------------------------------------------------------------------
def _pack_cell_stack(cells, in_feats, out_feats):
    H = out_feats
    wx3s, wh2s, b3s, wchs = [], [], [], []
    for layer, p in enumerate(cells):
        fin = in_feats if layer == 0 else out_feats
        wx3 = jnp.concatenate([p["wrx"], p["wux"], p["wcx"]], axis=1)   # (fin, 3H)
        wx3 = jnp.pad(wx3, ((0, H - fin), (0, 0)))                      # (H, 3H)
        wh2 = jnp.concatenate([p["wrh"], p["wuh"]], axis=1)             # (H, 2H)
        b3 = jnp.concatenate([p["br"], p["bu"], p["bc"]], axis=1)       # (1, 3H)
        wx3s.append(wx3)
        wh2s.append(wh2)
        b3s.append(b3)
        wchs.append(p["wch"])
    return (jnp.stack(wx3s), jnp.stack(wh2s), jnp.stack(b3s), jnp.stack(wchs))


# -----------------------------------------------------------------------------
# GraphRNN forward (eval mode: training=False -> no teacher forcing)
# -----------------------------------------------------------------------------
@functools.partial(jax.jit, static_argnames=("seq_len", "num_layers",
                                             "in_feats", "out_feats"))
def graph_rnn_forward(a_norm, inputs, teacher_states, params, *,
                      seq_len, num_layers, in_feats, out_feats):
    # TODO(synk): teacher-forcing branch depends on host-side np.random and
    # self.training; only the eval path (training=False) is implemented, so
    # `teacher_states` and `batch_cnt` do not influence the result.
    del teacher_states
    assert in_feats <= out_feats, "feature padding assumes in_feats <= out_feats"
    n = a_norm.shape[0]
    H = out_feats

    enc_wx3, enc_wh2, enc_b3, enc_wch = _pack_cell_stack(
        params["encoder"], in_feats, out_feats)
    dec_wx3, dec_wh2, dec_b3, dec_wch = _pack_cell_stack(
        params["decoder"], in_feats, out_feats)
    w_out = jnp.pad(params["w_out"], ((0, 0), (0, H - in_feats)))   # (H, H)
    b_out = jnp.pad(params["b_out"], ((0, 0), (0, H - in_feats)))   # (1, H)
    x_seq = jnp.pad(inputs, ((0, 0), (0, 0), (0, H - in_feats)))    # (T, N, H)

    kernel = functools.partial(graph_rnn_kernel, seq_len=seq_len,
                               num_layers=num_layers, hidden_dim=H)

    out_pad = pl.pallas_call(
        kernel,
        out_shape=jax.ShapeDtypeStruct((seq_len, n, H), jnp.float32),
        in_specs=[_VMEM_SPEC] * 12,
        out_specs=_VMEM_SPEC,
    )(a_norm, x_seq,
      enc_wx3, enc_wh2, enc_b3, enc_wch,
      dec_wx3, dec_wh2, dec_b3, dec_wch,
      w_out, b_out)

    return out_pad[:, :, :in_feats]      # (seq_len, N, in_feats)


# -----------------------------------------------------------------------------
# Parameter initialization (deterministic, torch-like uniform fan-in init)
# -----------------------------------------------------------------------------
def init_cell_params(key, fin, hdim):
    ks = jax.random.split(key, 9)
    bound_x = 1.0 / jnp.sqrt(fin)
    bound_h = 1.0 / jnp.sqrt(hdim)
    u = lambda k, shape, b: jax.random.uniform(k, shape, jnp.float32, -b, b)
    return {
        "wrx": u(ks[0], (fin, hdim), bound_x),
        "wrh": u(ks[1], (hdim, hdim), bound_h),
        "br":  u(ks[2], (1, hdim), bound_h),
        "wux": u(ks[3], (fin, hdim), bound_x),
        "wuh": u(ks[4], (hdim, hdim), bound_h),
        "bu":  u(ks[5], (1, hdim), bound_h),
        "wcx": u(ks[6], (fin, hdim), bound_x),
        "wch": u(ks[7], (hdim, hdim), bound_h),
        "bc":  u(ks[8], (1, hdim), bound_h),
    }


def init_graph_rnn_params(key, in_feats, out_feats, num_layers):
    keys = jax.random.split(key, 2 * num_layers + 1)
    enc, dec = [], []
    for layer in range(num_layers):
        fin = in_feats if layer == 0 else out_feats
        enc.append(init_cell_params(keys[layer], fin, out_feats))
        dec.append(init_cell_params(keys[num_layers + layer], fin, out_feats))
    ko = jax.random.split(keys[-1], 2)
    bound = 1.0 / jnp.sqrt(out_feats)
    w_out = jax.random.uniform(ko[0], (out_feats, in_feats), jnp.float32, -bound, bound)
    b_out = jax.random.uniform(ko[1], (1, in_feats), jnp.float32, -bound, bound)
    return {"encoder": enc, "decoder": dec, "w_out": w_out, "b_out": b_out}


# -----------------------------------------------------------------------------
# Pure-JAX reference (same math as the PyTorch module, no Pallas)
# -----------------------------------------------------------------------------
def _cell_ref(a, x, h, p):
    ax = a @ x
    ah = a @ h
    r = jax.nn.sigmoid(ax @ p["wrx"] + ah @ p["wrh"] + p["br"])
    u = jax.nn.sigmoid(ax @ p["wux"] + ah @ p["wuh"] + p["bu"])
    c = jnp.tanh(ax @ p["wcx"] + (a @ (r * h)) @ p["wch"] + p["bc"])
    return u * h + (1.0 - u) * c


def graph_rnn_reference(a_norm, inputs, params, seq_len, num_layers,
                        in_feats, out_feats):
    n = a_norm.shape[0]
    hidden = [jnp.zeros((n, out_feats), jnp.float32) for _ in range(num_layers)]
    for t in range(seq_len):
        x = inputs[t]
        new_hidden = []
        for layer in range(num_layers):
            x = _cell_ref(a_norm, x, hidden[layer], params["encoder"][layer])
            new_hidden.append(x)
        hidden = new_hidden
    outputs = []
    x_in = jnp.zeros((n, in_feats), jnp.float32)
    for t in range(seq_len):
        x = x_in
        new_hidden = []
        for layer in range(num_layers):
            x = _cell_ref(a_norm, x, hidden[layer], params["decoder"][layer])
            new_hidden.append(x)
        hidden = new_hidden
        x_in = x @ params["w_out"] + params["b_out"]
        outputs.append(x_in)
    return jnp.stack(outputs)


# -----------------------------------------------------------------------------
if __name__ == "__main__":
    IN_FEATS = 4        # input features per node
    OUT_FEATS = 32      # hidden size
    SEQ_LEN = 8
    NUM_LAYERS = 2
    NUM_NODES = 16
    DECAY_STEPS = 1000  # unused in eval mode (teacher forcing disabled)

    key = jax.random.PRNGKey(0)
    k_adj, k_in, k_teach, k_par = jax.random.split(key, 4)

    # Deterministic random graph -> row-normalized adjacency with self-loops.
    adj_raw = (jax.random.uniform(k_adj, (NUM_NODES, NUM_NODES)) > 0.7)
    adj = adj_raw.astype(jnp.float32) + jnp.eye(NUM_NODES, dtype=jnp.float32)
    a_norm = adj / jnp.sum(adj, axis=1, keepdims=True)

    inputs = jax.random.normal(k_in, (SEQ_LEN, NUM_NODES, IN_FEATS), jnp.float32)
    teacher_states = jax.random.normal(
        k_teach, (SEQ_LEN, NUM_NODES, IN_FEATS), jnp.float32)

    params = init_graph_rnn_params(k_par, IN_FEATS, OUT_FEATS, NUM_LAYERS)

    out = graph_rnn_forward(
        a_norm, inputs, teacher_states, params,
        seq_len=SEQ_LEN, num_layers=NUM_LAYERS,
        in_feats=IN_FEATS, out_feats=OUT_FEATS)
    out = jax.block_until_ready(out)

    ref = graph_rnn_reference(a_norm, inputs, params, SEQ_LEN, NUM_LAYERS,
                              IN_FEATS, OUT_FEATS)
    assert out.shape == (SEQ_LEN, NUM_NODES, IN_FEATS)
    assert jnp.allclose(out, ref, atol=1e-4, rtol=1e-4), (
        float(jnp.max(jnp.abs(out - ref))))

    print("KERNEL_OK")
</pallas_src>

<mosaic_0001>
module attributes {stable_mosaic.version = 11 : i64} {
  func.func @graph_rnn_kernel(%arg0: memref<16x16xf32, #tpu.memory_space<vmem>>, %arg1: memref<8x16x32xf32, #tpu.memory_space<vmem>>, %arg2: memref<2x32x96xf32, #tpu.memory_space<vmem>>, %arg3: memref<2x32x64xf32, #tpu.memory_space<vmem>>, %arg4: memref<2x1x96xf32, #tpu.memory_space<vmem>>, %arg5: memref<2x32x32xf32, #tpu.memory_space<vmem>>, %arg6: memref<2x32x96xf32, #tpu.memory_space<vmem>>, %arg7: memref<2x32x64xf32, #tpu.memory_space<vmem>>, %arg8: memref<2x1x96xf32, #tpu.memory_space<vmem>>, %arg9: memref<2x32x32xf32, #tpu.memory_space<vmem>>, %arg10: memref<32x32xf32, #tpu.memory_space<vmem>>, %arg11: memref<1x32xf32, #tpu.memory_space<vmem>>, %arg12: memref<8x16x32xf32, #tpu.memory_space<vmem>>) attributes {dimension_semantics = [], scalar_prefetch = 0 : i64, scratch_operands = 0 : i64, tpu.core_type = #tpu.core_type<tc>} {
    %c0 = arith.constant 0 : index
    %c0_0 = arith.constant 0 : index
    %0 = vector.load %arg0[%c0, %c0_0] : memref<16x16xf32, #tpu.memory_space<vmem>>, vector<16x16xf32>
    %cst = arith.constant 0.000000e+00 : f32
    %1 = vector.broadcast %cst : f32 to vector<16x32xf32>
    %cst_1 = arith.constant 0.000000e+00 : f32
    %2 = vector.broadcast %cst_1 : f32 to vector<16x32xf32>
    %c0_i32 = arith.constant 0 : i32
    %c8_i32 = arith.constant 8 : i32
    %3 = arith.addi %c0_i32, %c8_i32 : i32
    %c1_i32 = arith.constant 1 : i32
    %4:2 = scf.for %arg13 = %c0_i32 to %3 step %c1_i32 iter_args(%arg14 = %1, %arg15 = %2) -> (vector<16x32xf32>, vector<16x32xf32>)  : i32 {
      %10 = arith.index_cast %arg13 : i32 to index
      %c0_12 = arith.constant 0 : index
      %c0_13 = arith.constant 0 : index
      %11 = vector.load %arg1[%10, %c0_12, %c0_13] : memref<8x16x32xf32, #tpu.memory_space<vmem>>, vector<1x16x32xf32>
      %12 = vector.shape_cast %11 : vector<1x16x32xf32> to vector<16x32xf32>
      %c0_14 = arith.constant 0 : index
      %c0_15 = arith.constant 0 : index
      %c0_16 = arith.constant 0 : index
      %13 = vector.load %arg2[%c0_14, %c0_15, %c0_16] : memref<2x32x96xf32, #tpu.memory_space<vmem>>, vector<1x32x96xf32>
      %14 = vector.shape_cast %13 : vector<1x32x96xf32> to vector<32x96xf32>
      %c0_17 = arith.constant 0 : index
      %c0_18 = arith.constant 0 : index
      %c0_19 = arith.constant 0 : index
      %15 = vector.load %arg3[%c0_17, %c0_18, %c0_19] : memref<2x32x64xf32, #tpu.memory_space<vmem>>, vector<1x32x64xf32>
      %16 = vector.shape_cast %15 : vector<1x32x64xf32> to vector<32x64xf32>
      %c0_20 = arith.constant 0 : index
      %c0_21 = arith.constant 0 : index
      %c0_22 = arith.constant 0 : index
      %17 = vector.load %arg4[%c0_20, %c0_21, %c0_22] : memref<2x1x96xf32, #tpu.memory_space<vmem>>, vector<1x1x96xf32>
      %18 = vector.shape_cast %17 : vector<1x1x96xf32> to vector<1x96xf32>
      %c0_23 = arith.constant 0 : index
      %c0_24 = arith.constant 0 : index
      %c0_25 = arith.constant 0 : index
      %19 = vector.load %arg5[%c0_23, %c0_24, %c0_25] : memref<2x32x32xf32, #tpu.memory_space<vmem>>, vector<1x32x32xf32>
      %20 = vector.shape_cast %19 : vector<1x32x32xf32> to vector<32x32xf32>
      %cst_26 = arith.constant dense<0.000000e+00> : vector<16x96xf32>
      %21 = tpu.matmul %12, %14, %cst_26 {dimension_numbers = #tpu.dot_dimension_numbers<[1], [0], [0], [1], [0, 0, 1, 1], [], []>} : vector<16x32xf32>, vector<32x96xf32>, vector<16x96xf32> -> vector<16x96xf32>
      %cst_27 = arith.constant dense<0.000000e+00> : vector<16x64xf32>
      %22 = tpu.matmul %arg14, %16, %cst_27 {dimension_numbers = #tpu.dot_dimension_numbers<[1], [0], [0], [1], [0, 0, 1, 1], [], []>} : vector<16x32xf32>, vector<32x64xf32>, vector<16x64xf32> -> vector<16x64xf32>
      %23 = vector.extract_strided_slice %21 {offsets = [0, 0], sizes = [16, 64], strides = [1, 1]} : vector<16x96xf32> to vector<16x64xf32>
      %24 = arith.addf %23, %22 : vector<16x64xf32>
      %cst_28 = arith.constant dense<0.000000e+00> : vector<16x64xf32>
      %25 = tpu.matmul %0, %24, %cst_28 {dimension_numbers = #tpu.dot_dimension_numbers<[1], [0], [0], [1], [0, 0, 1, 1], [], []>} : vector<16x16xf32>, vector<16x64xf32>, vector<16x64xf32> -> vector<16x64xf32>
      %26 = vector.extract_strided_slice %18 {offsets = [0, 0], sizes = [1, 64], strides = [1, 1]} : vector<1x96xf32> to vector<1x64xf32>
      %27 = vector.broadcast %26 : vector<1x64xf32> to vector<16x64xf32>
      %28 = arith.addf %25, %27 : vector<16x64xf32>
      %29 = vector.extract_strided_slice %28 {offsets = [0, 0], sizes = [16, 32], strides = [1, 1]} : vector<16x64xf32> to vector<16x32xf32>
      %30 = arith.negf %29 : vector<16x32xf32>
      %31 = math.exp %30 : vector<16x32xf32>
      %cst_29 = arith.constant 1.000000e+00 : f32
      %32 = vector.broadcast %cst_29 : f32 to vector<16x32xf32>
      %33 = arith.addf %32, %31 : vector<16x32xf32>
      %34 = arith.divf %32, %33 : vector<16x32xf32>
      %35 = vector.extract_strided_slice %28 {offsets = [0, 32], sizes = [16, 32], strides = [1, 1]} : vector<16x64xf32> to vector<16x32xf32>
      %36 = arith.negf %35 : vector<16x32xf32>
      %37 = math.exp %36 : vector<16x32xf32>
      %cst_30 = arith.constant 1.000000e+00 : f32
      %38 = vector.broadcast %cst_30 : f32 to vector<16x32xf32>
      %39 = arith.addf %38, %37 : vector<16x32xf32>
      %40 = arith.divf %38, %39 : vector<16x32xf32>
      %41 = arith.mulf %34, %arg14 : vector<16x32xf32>
      %cst_31 = arith.constant dense<0.000000e+00> : vector<16x32xf32>
      %42 = tpu.matmul %41, %20, %cst_31 {dimension_numbers = #tpu.dot_dimension_numbers<[1], [0], [0], [1], [0, 0, 1, 1], [], []>} : vector<16x32xf32>, vector<32x32xf32>, vector<16x32xf32> -> vector<16x32xf32>
      %43 = vector.extract_strided_slice %21 {offsets = [0, 64], sizes = [16, 32], strides = [1, 1]} : vector<16x96xf32> to vector<16x32xf32>
      %44 = arith.addf %43, %42 : vector<16x32xf32>
      %cst_32 = arith.constant dense<0.000000e+00> : vector<16x32xf32>
      %45 = tpu.matmul %0, %44, %cst_32 {dimension_numbers = #tpu.dot_dimension_numbers<[1], [0], [0], [1], [0, 0, 1, 1], [], []>} : vector<16x16xf32>, vector<16x32xf32>, vector<16x32xf32> -> vector<16x32xf32>
      %46 = vector.extract_strided_slice %18 {offsets = [0, 64], sizes = [1, 32], strides = [1, 1]} : vector<1x96xf32> to vector<1x32xf32>
      %47 = vector.broadcast %46 : vector<1x32xf32> to vector<16x32xf32>
      %48 = arith.addf %45, %47 : vector<16x32xf32>
      %49 = math.tanh %48 : vector<16x32xf32>
      %50 = arith.mulf %40, %arg14 : vector<16x32xf32>
      %cst_33 = arith.constant 1.000000e+00 : f32
      %51 = vector.broadcast %cst_33 : f32 to vector<16x32xf32>
      %52 = arith.subf %51, %40 : vector<16x32xf32>
      %53 = arith.mulf %52, %49 : vector<16x32xf32>
      %54 = arith.addf %50, %53 : vector<16x32xf32>
      %c1 = arith.constant 1 : index
      %c0_34 = arith.constant 0 : index
      %c0_35 = arith.constant 0 : index
      %55 = vector.load %arg2[%c1, %c0_34, %c0_35] : memref<2x32x96xf32, #tpu.memory_space<vmem>>, vector<1x32x96xf32>
      %56 = vector.shape_cast %55 : vector<1x32x96xf32> to vector<32x96xf32>
      %c1_36 = arith.constant 1 : index
      %c0_37 = arith.constant 0 : index
      %c0_38 = arith.constant 0 : index
      %57 = vector.load %arg3[%c1_36, %c0_37, %c0_38] : memref<2x32x64xf32, #tpu.memory_space<vmem>>, vector<1x32x64xf32>
      %58 = vector.shape_cast %57 : vector<1x32x64xf32> to vector<32x64xf32>
      %c1_39 = arith.constant 1 : index
      %c0_40 = arith.constant 0 : index
      %c0_41 = arith.constant 0 : index
      %59 = vector.load %arg4[%c1_39, %c0_40, %c0_41] : memref<2x1x96xf32, #tpu.memory_space<vmem>>, vector<1x1x96xf32>
      %60 = vector.shape_cast %59 : vector<1x1x96xf32> to vector<1x96xf32>
      %c1_42 = arith.constant 1 : index
      %c0_43 = arith.constant 0 : index
      %c0_44 = arith.constant 0 : index
      %61 = vector.load %arg5[%c1_42, %c0_43, %c0_44] : memref<2x32x32xf32, #tpu.memory_space<vmem>>, vector<1x32x32xf32>
      %62 = vector.shape_cast %61 : vector<1x32x32xf32> to vector<32x32xf32>
      %cst_45 = arith.constant dense<0.000000e+00> : vector<16x96xf32>
      %63 = tpu.matmul %54, %56, %cst_45 {dimension_numbers = #tpu.dot_dimension_numbers<[1], [0], [0], [1], [0, 0, 1, 1], [], []>} : vector<16x32xf32>, vector<32x96xf32>, vector<16x96xf32> -> vector<16x96xf32>
      %cst_46 = arith.constant dense<0.000000e+00> : vector<16x64xf32>
      %64 = tpu.matmul %arg15, %58, %cst_46 {dimension_numbers = #tpu.dot_dimension_numbers<[1], [0], [0], [1], [0, 0, 1, 1], [], []>} : vector<16x32xf32>, vector<32x64xf32>, vector<16x64xf32> -> vector<16x64xf32>
      %65 = vector.extract_strided_slice %63 {offsets = [0, 0], sizes = [16, 64], strides = [1, 1]} : vector<16x96xf32> to vector<16x64xf32>
      %66 = arith.addf %65, %64 : vector<16x64xf32>
      %cst_47 = arith.constant dense<0.000000e+00> : vector<16x64xf32>
      %67 = tpu.matmul %0, %66, %cst_47 {dimension_numbers = #tpu.dot_dimension_numbers<[1], [0], [0], [1], [0, 0, 1, 1], [], []>} : vector<16x16xf32>, vector<16x64xf32>, vector<16x64xf32> -> vector<16x64xf32>
      %68 = vector.extract_strided_slice %60 {offsets = [0, 0], sizes = [1, 64], strides = [1, 1]} : vector<1x96xf32> to vector<1x64xf32>
      %69 = vector.broadcast %68 : vector<1x64xf32> to vector<16x64xf32>
      %70 = arith.addf %67, %69 : vector<16x64xf32>
      %71 = vector.extract_strided_slice %70 {offsets = [0, 0], sizes = [16, 32], strides = [1, 1]} : vector<16x64xf32> to vector<16x32xf32>
      %72 = arith.negf %71 : vector<16x32xf32>
      %73 = math.exp %72 : vector<16x32xf32>
      %cst_48 = arith.constant 1.000000e+00 : f32
      %74 = vector.broadcast %cst_48 : f32 to vector<16x32xf32>
      %75 = arith.addf %74, %73 : vector<16x32xf32>
      %76 = arith.divf %74, %75 : vector<16x32xf32>
      %77 = vector.extract_strided_slice %70 {offsets = [0, 32], sizes = [16, 32], strides = [1, 1]} : vector<16x64xf32> to vector<16x32xf32>
      %78 = arith.negf %77 : vector<16x32xf32>
      %79 = math.exp %78 : vector<16x32xf32>
      %cst_49 = arith.constant 1.000000e+00 : f32
      %80 = vector.broadcast %cst_49 : f32 to vector<16x32xf32>
      %81 = arith.addf %80, %79 : vector<16x32xf32>
      %82 = arith.divf %80, %81 : vector<16x32xf32>
      %83 = arith.mulf %76, %arg15 : vector<16x32xf32>
      %cst_50 = arith.constant dense<0.000000e+00> : vector<16x32xf32>
      %84 = tpu.matmul %83, %62, %cst_50 {dimension_numbers = #tpu.dot_dimension_numbers<[1], [0], [0], [1], [0, 0, 1, 1], [], []>} : vector<16x32xf32>, vector<32x32xf32>, vector<16x32xf32> -> vector<16x32xf32>
      %85 = vector.extract_strided_slice %63 {offsets = [0, 64], sizes = [16, 32], strides = [1, 1]} : vector<16x96xf32> to vector<16x32xf32>
      %86 = arith.addf %85, %84 : vector<16x32xf32>
      %cst_51 = arith.constant dense<0.000000e+00> : vector<16x32xf32>
      %87 = tpu.matmul %0, %86, %cst_51 {dimension_numbers = #tpu.dot_dimension_numbers<[1], [0], [0], [1], [0, 0, 1, 1], [], []>} : vector<16x16xf32>, vector<16x32xf32>, vector<16x32xf32> -> vector<16x32xf32>
      %88 = vector.extract_strided_slice %60 {offsets = [0, 64], sizes = [1, 32], strides = [1, 1]} : vector<1x96xf32> to vector<1x32xf32>
      %89 = vector.broadcast %88 : vector<1x32xf32> to vector<16x32xf32>
      %90 = arith.addf %87, %89 : vector<16x32xf32>
      %91 = math.tanh %90 : vector<16x32xf32>
      %92 = arith.mulf %82, %arg15 : vector<16x32xf32>
      %cst_52 = arith.constant 1.000000e+00 : f32
      %93 = vector.broadcast %cst_52 : f32 to vector<16x32xf32>
      %94 = arith.subf %93, %82 : vector<16x32xf32>
      %95 = arith.mulf %94, %91 : vector<16x32xf32>
      %96 = arith.addf %92, %95 : vector<16x32xf32>
      scf.yield %54, %96 : vector<16x32xf32>, vector<16x32xf32>
    }
    %c8_i32_2 = arith.constant 8 : i32
    %c0_3 = arith.constant 0 : index
    %c0_4 = arith.constant 0 : index
    %5 = vector.load %arg10[%c0_3, %c0_4] : memref<32x32xf32, #tpu.memory_space<vmem>>, vector<32x32xf32>
    %c0_5 = arith.constant 0 : index
    %c0_6 = arith.constant 0 : index
    %6 = vector.load %arg11[%c0_5, %c0_6] : memref<1x32xf32, #tpu.memory_space<vmem>>, vector<1x32xf32>
    %cst_7 = arith.constant 0.000000e+00 : f32
    %7 = vector.broadcast %cst_7 : f32 to vector<16x32xf32>
    %c0_i32_8 = arith.constant 0 : i32
    %c8_i32_9 = arith.constant 8 : i32
    %8 = arith.addi %c0_i32_8, %c8_i32_9 : i32
    %c1_i32_10 = arith.constant 1 : i32
    %9:3 = scf.for %arg13 = %c0_i32_8 to %8 step %c1_i32_10 iter_args(%arg14 = %7, %arg15 = %4#0, %arg16 = %4#1) -> (vector<16x32xf32>, vector<16x32xf32>, vector<16x32xf32>)  : i32 {
      %c0_12 = arith.constant 0 : index
      %c0_13 = arith.constant 0 : index
      %c0_14 = arith.constant 0 : index
      %10 = vector.load %arg6[%c0_12, %c0_13, %c0_14] : memref<2x32x96xf32, #tpu.memory_space<vmem>>, vector<1x32x96xf32>
      %11 = vector.shape_cast %10 : vector<1x32x96xf32> to vector<32x96xf32>
      %c0_15 = arith.constant 0 : index
      %c0_16 = arith.constant 0 : index
      %c0_17 = arith.constant 0 : index
      %12 = vector.load %arg7[%c0_15, %c0_16, %c0_17] : memref<2x32x64xf32, #tpu.memory_space<vmem>>, vector<1x32x64xf32>
      %13 = vector.shape_cast %12 : vector<1x32x64xf32> to vector<32x64xf32>
      %c0_18 = arith.constant 0 : index
      %c0_19 = arith.constant 0 : index
      %c0_20 = arith.constant 0 : index
      %14 = vector.load %arg8[%c0_18, %c0_19, %c0_20] : memref<2x1x96xf32, #tpu.memory_space<vmem>>, vector<1x1x96xf32>
      %15 = vector.shape_cast %14 : vector<1x1x96xf32> to vector<1x96xf32>
      %c0_21 = arith.constant 0 : index
      %c0_22 = arith.constant 0 : index
      %c0_23 = arith.constant 0 : index
      %16 = vector.load %arg9[%c0_21, %c0_22, %c0_23] : memref<2x32x32xf32, #tpu.memory_space<vmem>>, vector<1x32x32xf32>
      %17 = vector.shape_cast %16 : vector<1x32x32xf32> to vector<32x32xf32>
      %cst_24 = arith.constant dense<0.000000e+00> : vector<16x96xf32>
      %18 = tpu.matmul %arg14, %11, %cst_24 {dimension_numbers = #tpu.dot_dimension_numbers<[1], [0], [0], [1], [0, 0, 1, 1], [], []>} : vector<16x32xf32>, vector<32x96xf32>, vector<16x96xf32> -> vector<16x96xf32>
      %cst_25 = arith.constant dense<0.000000e+00> : vector<16x64xf32>
      %19 = tpu.matmul %arg15, %13, %cst_25 {dimension_numbers = #tpu.dot_dimension_numbers<[1], [0], [0], [1], [0, 0, 1, 1], [], []>} : vector<16x32xf32>, vector<32x64xf32>, vector<16x64xf32> -> vector<16x64xf32>
      %20 = vector.extract_strided_slice %18 {offsets = [0, 0], sizes = [16, 64], strides = [1, 1]} : vector<16x96xf32> to vector<16x64xf32>
      %21 = arith.addf %20, %19 : vector<16x64xf32>
      %cst_26 = arith.constant dense<0.000000e+00> : vector<16x64xf32>
      %22 = tpu.matmul %0, %21, %cst_26 {dimension_numbers = #tpu.dot_dimension_numbers<[1], [0], [0], [1], [0, 0, 1, 1], [], []>} : vector<16x16xf32>, vector<16x64xf32>, vector<16x64xf32> -> vector<16x64xf32>
      %23 = vector.extract_strided_slice %15 {offsets = [0, 0], sizes = [1, 64], strides = [1, 1]} : vector<1x96xf32> to vector<1x64xf32>
      %24 = vector.broadcast %23 : vector<1x64xf32> to vector<16x64xf32>
      %25 = arith.addf %22, %24 : vector<16x64xf32>
      %26 = vector.extract_strided_slice %25 {offsets = [0, 0], sizes = [16, 32], strides = [1, 1]} : vector<16x64xf32> to vector<16x32xf32>
      %27 = arith.negf %26 : vector<16x32xf32>
      %28 = math.exp %27 : vector<16x32xf32>
      %cst_27 = arith.constant 1.000000e+00 : f32
      %29 = vector.broadcast %cst_27 : f32 to vector<16x32xf32>
      %30 = arith.addf %29, %28 : vector<16x32xf32>
      %31 = arith.divf %29, %30 : vector<16x32xf32>
      %32 = vector.extract_strided_slice %25 {offsets = [0, 32], sizes = [16, 32], strides = [1, 1]} : vector<16x64xf32> to vector<16x32xf32>
      %33 = arith.negf %32 : vector<16x32xf32>
      %34 = math.exp %33 : vector<16x32xf32>
      %cst_28 = arith.constant 1.000000e+00 : f32
      %35 = vector.broadcast %cst_28 : f32 to vector<16x32xf32>
      %36 = arith.addf %35, %34 : vector<16x32xf32>
      %37 = arith.divf %35, %36 : vector<16x32xf32>
      %38 = arith.mulf %31, %arg15 : vector<16x32xf32>
      %cst_29 = arith.constant dense<0.000000e+00> : vector<16x32xf32>
      %39 = tpu.matmul %38, %17, %cst_29 {dimension_numbers = #tpu.dot_dimension_numbers<[1], [0], [0], [1], [0, 0, 1, 1], [], []>} : vector<16x32xf32>, vector<32x32xf32>, vector<16x32xf32> -> vector<16x32xf32>
      %40 = vector.extract_strided_slice %18 {offsets = [0, 64], sizes = [16, 32], strides = [1, 1]} : vector<16x96xf32> to vector<16x32xf32>
      %41 = arith.addf %40, %39 : vector<16x32xf32>
      %cst_30 = arith.constant dense<0.000000e+00> : vector<16x32xf32>
      %42 = tpu.matmul %0, %41, %cst_30 {dimension_numbers = #tpu.dot_dimension_numbers<[1], [0], [0], [1], [0, 0, 1, 1], [], []>} : vector<16x16xf32>, vector<16x32xf32>, vector<16x32xf32> -> vector<16x32xf32>
      %43 = vector.extract_strided_slice %15 {offsets = [0, 64], sizes = [1, 32], strides = [1, 1]} : vector<1x96xf32> to vector<1x32xf32>
      %44 = vector.broadcast %43 : vector<1x32xf32> to vector<16x32xf32>
      %45 = arith.addf %42, %44 : vector<16x32xf32>
      %46 = math.tanh %45 : vector<16x32xf32>
      %47 = arith.mulf %37, %arg15 : vector<16x32xf32>
      %cst_31 = arith.constant 1.000000e+00 : f32
      %48 = vector.broadcast %cst_31 : f32 to vector<16x32xf32>
      %49 = arith.subf %48, %37 : vector<16x32xf32>
      %50 = arith.mulf %49, %46 : vector<16x32xf32>
      %51 = arith.addf %47, %50 : vector<16x32xf32>
      %c1 = arith.constant 1 : index
      %c0_32 = arith.constant 0 : index
      %c0_33 = arith.constant 0 : index
      %52 = vector.load %arg6[%c1, %c0_32, %c0_33] : memref<2x32x96xf32, #tpu.memory_space<vmem>>, vector<1x32x96xf32>
      %53 = vector.shape_cast %52 : vector<1x32x96xf32> to vector<32x96xf32>
      %c1_34 = arith.constant 1 : index
      %c0_35 = arith.constant 0 : index
      %c0_36 = arith.constant 0 : index
      %54 = vector.load %arg7[%c1_34, %c0_35, %c0_36] : memref<2x32x64xf32, #tpu.memory_space<vmem>>, vector<1x32x64xf32>
      %55 = vector.shape_cast %54 : vector<1x32x64xf32> to vector<32x64xf32>
      %c1_37 = arith.constant 1 : index
      %c0_38 = arith.constant 0 : index
      %c0_39 = arith.constant 0 : index
      %56 = vector.load %arg8[%c1_37, %c0_38, %c0_39] : memref<2x1x96xf32, #tpu.memory_space<vmem>>, vector<1x1x96xf32>
      %57 = vector.shape_cast %56 : vector<1x1x96xf32> to vector<1x96xf32>
      %c1_40 = arith.constant 1 : index
      %c0_41 = arith.constant 0 : index
      %c0_42 = arith.constant 0 : index
      %58 = vector.load %arg9[%c1_40, %c0_41, %c0_42] : memref<2x32x32xf32, #tpu.memory_space<vmem>>, vector<1x32x32xf32>
      %59 = vector.shape_cast %58 : vector<1x32x32xf32> to vector<32x32xf32>
      %cst_43 = arith.constant dense<0.000000e+00> : vector<16x96xf32>
      %60 = tpu.matmul %51, %53, %cst_43 {dimension_numbers = #tpu.dot_dimension_numbers<[1], [0], [0], [1], [0, 0, 1, 1], [], []>} : vector<16x32xf32>, vector<32x96xf32>, vector<16x96xf32> -> vector<16x96xf32>
      %cst_44 = arith.constant dense<0.000000e+00> : vector<16x64xf32>
      %61 = tpu.matmul %arg16, %55, %cst_44 {dimension_numbers = #tpu.dot_dimension_numbers<[1], [0], [0], [1], [0, 0, 1, 1], [], []>} : vector<16x32xf32>, vector<32x64xf32>, vector<16x64xf32> -> vector<16x64xf32>
      %62 = vector.extract_strided_slice %60 {offsets = [0, 0], sizes = [16, 64], strides = [1, 1]} : vector<16x96xf32> to vector<16x64xf32>
      %63 = arith.addf %62, %61 : vector<16x64xf32>
      %cst_45 = arith.constant dense<0.000000e+00> : vector<16x64xf32>
      %64 = tpu.matmul %0, %63, %cst_45 {dimension_numbers = #tpu.dot_dimension_numbers<[1], [0], [0], [1], [0, 0, 1, 1], [], []>} : vector<16x16xf32>, vector<16x64xf32>, vector<16x64xf32> -> vector<16x64xf32>
      %65 = vector.extract_strided_slice %57 {offsets = [0, 0], sizes = [1, 64], strides = [1, 1]} : vector<1x96xf32> to vector<1x64xf32>
      %66 = vector.broadcast %65 : vector<1x64xf32> to vector<16x64xf32>
      %67 = arith.addf %64, %66 : vector<16x64xf32>
      %68 = vector.extract_strided_slice %67 {offsets = [0, 0], sizes = [16, 32], strides = [1, 1]} : vector<16x64xf32> to vector<16x32xf32>
      %69 = arith.negf %68 : vector<16x32xf32>
      %70 = math.exp %69 : vector<16x32xf32>
      %cst_46 = arith.constant 1.000000e+00 : f32
      %71 = vector.broadcast %cst_46 : f32 to vector<16x32xf32>
      %72 = arith.addf %71, %70 : vector<16x32xf32>
      %73 = arith.divf %71, %72 : vector<16x32xf32>
      %74 = vector.extract_strided_slice %67 {offsets = [0, 32], sizes = [16, 32], strides = [1, 1]} : vector<16x64xf32> to vector<16x32xf32>
      %75 = arith.negf %74 : vector<16x32xf32>
      %76 = math.exp %75 : vector<16x32xf32>
      %cst_47 = arith.constant 1.000000e+00 : f32
      %77 = vector.broadcast %cst_47 : f32 to vector<16x32xf32>
      %78 = arith.addf %77, %76 : vector<16x32xf32>
      %79 = arith.divf %77, %78 : vector<16x32xf32>
      %80 = arith.mulf %73, %arg16 : vector<16x32xf32>
      %cst_48 = arith.constant dense<0.000000e+00> : vector<16x32xf32>
      %81 = tpu.matmul %80, %59, %cst_48 {dimension_numbers = #tpu.dot_dimension_numbers<[1], [0], [0], [1], [0, 0, 1, 1], [], []>} : vector<16x32xf32>, vector<32x32xf32>, vector<16x32xf32> -> vector<16x32xf32>
      %82 = vector.extract_strided_slice %60 {offsets = [0, 64], sizes = [16, 32], strides = [1, 1]} : vector<16x96xf32> to vector<16x32xf32>
      %83 = arith.addf %82, %81 : vector<16x32xf32>
      %cst_49 = arith.constant dense<0.000000e+00> : vector<16x32xf32>
      %84 = tpu.matmul %0, %83, %cst_49 {dimension_numbers = #tpu.dot_dimension_numbers<[1], [0], [0], [1], [0, 0, 1, 1], [], []>} : vector<16x16xf32>, vector<16x32xf32>, vector<16x32xf32> -> vector<16x32xf32>
      %85 = vector.extract_strided_slice %57 {offsets = [0, 64], sizes = [1, 32], strides = [1, 1]} : vector<1x96xf32> to vector<1x32xf32>
      %86 = vector.broadcast %85 : vector<1x32xf32> to vector<16x32xf32>
      %87 = arith.addf %84, %86 : vector<16x32xf32>
      %88 = math.tanh %87 : vector<16x32xf32>
      %89 = arith.mulf %79, %arg16 : vector<16x32xf32>
      %cst_50 = arith.constant 1.000000e+00 : f32
      %90 = vector.broadcast %cst_50 : f32 to vector<16x32xf32>
      %91 = arith.subf %90, %79 : vector<16x32xf32>
      %92 = arith.mulf %91, %88 : vector<16x32xf32>
      %93 = arith.addf %89, %92 : vector<16x32xf32>
      %cst_51 = arith.constant dense<0.000000e+00> : vector<16x32xf32>
      %94 = tpu.matmul %93, %5, %cst_51 {dimension_numbers = #tpu.dot_dimension_numbers<[1], [0], [0], [1], [0, 0, 1, 1], [], []>} : vector<16x32xf32>, vector<32x32xf32>, vector<16x32xf32> -> vector<16x32xf32>
      %95 = vector.broadcast %6 : vector<1x32xf32> to vector<16x32xf32>
      %96 = arith.addf %94, %95 : vector<16x32xf32>
      %97 = arith.index_cast %arg13 : i32 to index
      %c0_52 = arith.constant 0 : index
      %c0_53 = arith.constant 0 : index
      %98 = vector.load %arg12[%97, %c0_52, %c0_53] : memref<8x16x32xf32, #tpu.memory_space<vmem>>, vector<1x16x32xf32>
      %99 = vector.shape_cast %98 : vector<1x16x32xf32> to vector<16x32xf32>
      %100 = vector.shape_cast %96 : vector<16x32xf32> to vector<1x16x32xf32>
      tpu.vector_store %arg12[%97, %c0_52, %c0_53], %100 {strides = array<i32>} : memref<8x16x32xf32, #tpu.memory_space<vmem>>, vector<1x16x32xf32>,
      scf.yield %96, %51, %93 : vector<16x32xf32>, vector<16x32xf32>, vector<16x32xf32>
    }
    %c8_i32_11 = arith.constant 8 : i32
    return
  }
}

</mosaic_0001>

<bundles_post_ra>
// kernel: graph_rnn_forward.1
= control target key start
LH: loop header
LB: loop body
LE: loop exit
PB: predicated region body
PF: predicated region fallthrough
CT: control target
= control target key end

     0   :  { %v2860_v2 = vmov 0.0   ;;  %v2862_v3 = vmov 0.0   ;;  %v2864_v4 = vmov 0.0   ;;  %v2866_v5 = vmov 0.0   ;;  %s2868_s25 = smov 0   ;;  %s3297_s0 = inlined_call_operand.vmem [shape: f32[16,16], index: 0, kind: input, shape index: {}]   ;;  %s3298_s1 = inlined_call_operand.vmem [shape: f32[8,16,32], index: 1, kind: input, shape index: {}]   ;;  %s3299_s2 = inlined_call_operand.vmem [shape: f32[2,32,96], index: 2, kind: input, shape index: {}]   ;;  %s3300_s3 = inlined_call_operand.vmem [shape: f32[2,32,64], index: 3, kind: input, shape index: {}]   ;;  %s3301_s4 = inlined_call_operand.vmem [shape: f32[2,1,96], index: 4, kind: input, shape index: {}]   ;;  %s3302_s5 = inlined_call_operand.vmem [shape: f32[2,32,32], index: 5, kind: input, shape index: {}]   ;;  %s3303_s6 = inlined_call_operand.vmem [shape: f32[2,32,96], index: 6, kind: input, shape index: {}]   ;;  %s3304_s7 = inlined_call_operand.vmem [shape: f32[2,32,64], index: 7, kind: input, shape index: {}]   ;;  %s3305_s8 = inlined_call_operand.vmem [shape: f32[2,1,96], index: 8, kind: input, shape index: {}]   ;;  %s3306_s9 = inlined_call_operand.vmem [shape: f32[2,32,32], index: 9, kind: input, shape index: {}]   ;;  %s3307_s10 = inlined_call_operand.vmem [shape: f32[32,32], index: 10, kind: input, shape index: {}]   ;;  %s3308_s11 = inlined_call_operand.vmem [shape: f32[1,32], index: 11, kind: input, shape index: {}]   ;;  %s3309_s12 = inlined_call_operand.vmem [shape: f32[8,16,32], index: 12, kind: output, shape index: {}]  }
   0x1   :  { %v2853_v0 = vld [vmem:[%s3297_s0] sm:$0xff]  ;;  %v2858_v1 = vld [vmem:[%s3297_s0 + $0x8] sm:$0xff] }
   0x2 LB: > { %v60_v6 = vld [vmem:[%s3299_s2 + $0x18] sm:$0xff]  ;;  %v59_v7 = vld [vmem:[%s3299_s2 + $0x10] sm:$0xff]  ;;  %s2779_s15 = smov 96   ;;  %v58_v10 = vld [vmem:[%s3299_s2 + $0x8] sm:$0xff]  ;;  %s2141_s18 = sshll.u32 %s2749_s25, 4  ;;  %vm70_vm0 = vcmask 261120   ;;  %s2749_s25 = sphi %s2868_s25, %s48_s25   ;;  %v2745_v5 = vphi %v2866_v5, %v3315_v5   ;;  %v2741_v4 = vphi %v2864_v4, %v3314_v4   ;;  %v2737_v3 = vphi %v2862_v3, %v3313_v3   ;;  %v2733_v2 = vphi %v2860_v2, %v3312_v2  }
   0x3   : > { %v64_v8 = vld [vmem:[%s3300_s3 + $0x18] sm:$0xff]  ;;  %2334 = vmatprep.subr.mxu0 %v60_v6  ;;  %v63_v9 = vld [vmem:[%s3300_s3 + $0x10] sm:$0xff]  ;;  %154 = vrot.lane.b32.xlu0 %v2745_v5, %s2779_s15  ;;  %s54_s21 = scalar_lea.vmem %s3298_s1, %s2141_s18  ;;  %v57_v11 = vld [vmem:[%s3299_s2] sm:$0xff]  ;;  %vm245_vm1 = vcmask 130048   ;;  %s2781_s14 = smov 32  }
   0x4   : > { %2345 = vmatprep.subr.mxu1 %v64_v8  ;;  %2335 = vmatpush3.msra.mxu0 %v60_v6  ;;  %v62_v12 = vld [vmem:[%s3300_s3 + $0x8] sm:$0xff]  ;;  %v55_v13 = vld [vmem:[%s54_s21] sm:$0xff]  ;;  %v69_v24 = vld [vmem:[%s3302_s5 + $0x18] sm:$0xff]  ;;  %s48_s25 = sadd.s32 1, %s2749_s25  }
   0x5   : > { %2336 = vmatprep.subr.mxu0 %v59_v7  ;;  %2346 = vmatpush3.msra.mxu1 %v64_v8  ;;  %v56_v14 = vld [vmem:[%s54_s21 + $0x8] sm:$0xff]  ;;  %v61_v15 = vld [vmem:[%s3300_s3] sm:$0xff]  ;;  %v68_v25 = vld [vmem:[%s3302_s5 + $0x10] sm:$0xff]  ;;  %s2780_s21 = smov 64   ;;  %p45_p0 = scmp.ge.s32.totalorder %s48_s25, 8  }
   0x6   : > { %2337 = vmatpush3.msra.mxu0 %v59_v7  ;;  %2347 = vmatprep.subr.mxu1 %v63_v9  ;;  %v67_v26 = vld [vmem:[%s3302_s5 + $0x8] sm:$0xff]  ;;  %v66_v27 = vld [vmem:[%s3302_s5] sm:$0xff]  ;;  %v2162_v56 = vld [vmem:[%s3300_s3 + $0x38] sm:$0xff] }
   0x7   : > { %2338 = vmatprep.subr.mxu0 %v58_v10  ;;  %2348 = vmatpush3.msra.mxu1 %v63_v9  ;;  %v2146_v28 = vld [vmem:[%s3301_s4] ss:$0 sm:$0xff]  ;;  %v2158_v57 = vld [vmem:[%s3299_s2 + $0x38] sm:$0xff]  ;;  %v2161_v58 = vld [vmem:[%s3300_s3 + $0x30] sm:$0xff] }
   0x8   : > { %156 = vrot.lane.b32.xlu0 %v2741_v4, %s2779_s15  ;;  %2339 = vmatpush3.msra.mxu0 %v58_v10  ;;  %v2157_v59 = vld [vmem:[%s3299_s2 + $0x30] sm:$0xff]  ;;  %v2160_v61 = vld [vmem:[%s3300_s3 + $0x28] sm:$0xff]  ;;  %v2159_v6 = vld [vmem:[%s3300_s3 + $0x20] sm:$0xff]  ;;  %s3091_s3 = smov (%p45_p0), 0  }
   0x9   : > { %2340 = vmatprep.subr.mxu0 %v57_v11  ;;  %2349 = vmatprep.subr.mxu1 %v62_v12  ;;  %v2156_v63 = vld [vmem:[%s3299_s2 + $0x28] sm:$0xff]  ;;  %v2155_v7 = vld [vmem:[%s3299_s2 + $0x20] sm:$0xff] }
   0xa   : > { %2341 = vmatpush3.msra.mxu0 %v57_v11  ;;  %2342 = vmatprep.mubr.msk.f32.mxu0 %vm70_vm0, %v55_v13 }
   0xb   : > { %2350 = vmatpush3.msra.mxu1 %v62_v12  ;;  %2343 = vmatmul.mubr.msk.f32.vlgmr.msra.gmra.mxu0 %vm70_vm0, %v56_v14 }
   0xc   : > { %2351 = vmatprep.subr.mxu1 %v61_v15  ;;  %2360 = vmatprep.mubr.msk.f32.mxu0 %vm245_vm1, %v2853_v0 }
   0xd   : > { %2352 = vmatpush3.msra.mxu1 %v61_v15 }
   0xe   : > { %2363 = vmatprep.subr.mxu1 %v69_v24 }
  0x75   : > { %v155_v16 = vpop.permute.xlu0 %154 }
  0x76   : > { %2353 = vmatprep.mubr.msk.f32.mxu1 %vm70_vm0, %v155_v16 }
  0x7a   : > { %v157_v17 = vpop.permute.xlu0 %156 }
  0x7b   : > { %2354 = vmatmul.mubr.msk.f32.vlgmr.msra.gmra.mxu1 %vm70_vm0, %v157_v17 }
  0x7c   : > { %2364 = vmatpush3.msra.mxu1 %v69_v24 }
  0x7d   : > { %2365 = vmatprep.subr.mxu1 %v68_v25 }
  0x7e   : > { %2366 = vmatpush3.msra.mxu1 %v68_v25 }
  0x7f   : > { %2367 = vmatprep.subr.mxu1 %v67_v26 }
  0x80   : > { %2368 = vmatpush3.msra.mxu1 %v67_v26  ;;  %v2167_v26 = vld [vmem:[%s3302_s5 + $0x38] sm:$0xff] }
  0x81   : > { %2369 = vmatprep.subr.mxu1 %v66_v27 }
  0x82   : > { %2370 = vmatpush3.msra.mxu1 %v66_v27  ;;  %v2166_v27 = vld [vmem:[%s3302_s5 + $0x30] sm:$0xff] }
  0x83   : > { %2392 = vmatprep.subr.mxu1 %v2162_v56 }
  0xcb   : > { %v2344_v18 = vpop.f32.mrf.mxu0 }
  0xcd   : > { %v143_v21 = vpop.f32.mrf.mxu0 }
 0x13b   : > { %v2355_v19 = vpop.f32.mrf.mxu1 }
 0x13c   : > { %v238_v20 = vadd.f32 %v2355_v19, %v2344_v18 }
 0x13d   : > { %v228_v22 = vpop.f32.mrf.mxu1 }
 0x13e   : > { %v237_v23 = vadd.f32 %v228_v22, %v143_v21  ;;  %2356 = vmatprep.subr.mxu0 %v238_v20 }
 0x13f   : > { %2357 = vmatpush3.msra.mxu0 %v238_v20 }
 0x140   : > { %2358 = vmatprep.subr.mxu0 %v237_v23 }
 0x141   : > { %2359 = vmatpush3.msra.mxu0 %v237_v23 }
 0x142   : > { %2361 = vmatmul.mubr.msk.f32.vlgmr.msra.gmra.mxu0 %vm245_vm1, %v2858_v1 }
 0x143   : > { %2378 = vmatprep.mubr.msk.f32.mxu0 %vm245_vm1, %v2853_v0 }
 0x202   : > { %v2362_v29 = vpop.f32.mrf.mxu0 }
 0x203   : > { %v324_v30 = vadd.f32 %v2362_v29, %v2146_v28  ;;  %v2164_v29 = vld [vmem:[%s3302_s5 + $0x20] sm:$0xff] }
 0x204   : > { %v318_v31 = vpop.f32.mrf.mxu0 }
 0x205   : > { %v2150_v32 = vmul.f32 -1.442695, %v324_v30  ;;  %v319_v33 = vadd.f32 %v2146_v28, %v318_v31  ;;  %v2172_v30 = vld [vmem:[%s3301_s4 + $0x1] ss:$0 sm:$0xff] }
 0x207   : > { %2635 = vpow2.f32 %v2150_v32  ;;  %v2149_v34 = vmul.f32 -1.442695, %v319_v33 }
 0x209   : > { %2637 = vpow2.f32 %v2149_v34 }
 0x214   : > { %v2636_v35 = vpop.eup %2635 }
 0x215   : > { %v334_v36 = vadd.f32 1.0, %v2636_v35 }
 0x216   : > { %v2638_v37 = vpop.eup %2637 }
 0x217   : > { %v333_v38 = vadd.f32 1.0, %v2638_v37  ;;  %2639 = vrcp.f32 %v334_v36 }
 0x219   : > { %2641 = vrcp.f32 %v333_v38 }
 0x224   : > { %v2942_v39 = vpop.eup %2639 }
 0x225   : > { %v342_v42 = vmul.f32 %v2942_v39, %v157_v17  ;;  %v525_v11 = vsub.f32 1.0, %v2942_v39  ;;  %v523_v17 = vmul.f32 %v2741_v4, %v2942_v39 }
 0x226   : > { %v2944_v40 = vpop.eup %2641 }
 0x227   : > { %v341_v41 = vmul.f32 %v2944_v40, %v155_v16  ;;  %v524_v9 = vsub.f32 1.0, %v2944_v40  ;;  %v522_v12 = vmul.f32 %v2745_v5, %v2944_v40 }
 0x229   : > { %2371 = vmatprep.mubr.msk.f32.mxu1 %vm70_vm0, %v341_v41 }
 0x22a   : > { %2372 = vmatmul.mubr.msk.f32.vlgmr.msra.gmra.mxu1 %vm70_vm0, %v342_v42 }
 0x22b   : > { %2393 = vmatpush3.msra.mxu1 %v2162_v56 }
 0x22c   : > { %2394 = vmatprep.subr.mxu1 %v2161_v58 }
 0x22d   : > { %2395 = vmatpush3.msra.mxu1 %v2161_v58 }
 0x22e   : > { %2396 = vmatprep.subr.mxu1 %v2160_v61 }
 0x22f   : > { %2397 = vmatpush3.msra.mxu1 %v2160_v61 }
 0x230   : > { %2398 = vmatprep.subr.mxu1 %v2159_v6 }
 0x231   : > { %2399 = vmatpush3.msra.mxu1 %v2159_v6 }
 0x232   : > { %2410 = vmatprep.subr.mxu1 %v2167_v26 }
 0x2ea   : > { %v2373_v43 = vpop.f32.mrf.mxu1 }
 0x2eb   : > { %428 = vrot.lane.b32.xlu1 %v2373_v43, %s2780_s21 }
 0x2ec   : > { %v415_v44 = vpop.f32.mrf.mxu1 }
 0x2ef   : > { %426 = vrot.lane.b32.xlu1 %v415_v44, %s2780_s21 }
 0x35d   : > { %v429_v45 = vpop.permute.xlu1 %428 }
 0x35e   : > { %v433_v46 = vadd.f32 %v2344_v18, %v429_v45 }
 0x360   : > { %438 = vrot.lane.b32.xlu0 %v433_v46, %s2780_s21 }
 0x361   : > { %v427_v47 = vpop.permute.xlu1 %426 }
 0x362   : > { %v432_v48 = vadd.f32 %v427_v47, %v143_v21 }
 0x364   : > { %436 = vrot.lane.b32.xlu1 %v432_v48, %s2780_s21  ;;  %442 = vrot.lane.b32.xlu0 %v2146_v28, %s2780_s21  ;;  %v2165_v28 = vld [vmem:[%s3302_s5 + $0x28] sm:$0xff] }
 0x3d2   : > { %v439_v49 = vpop.permute.xlu0 %438 }
 0x3d3   : > { %2374 = vmatprep.subr.mxu0 %v439_v49 }
 0x3d4   : > { %2375 = vmatpush3.msra.mxu0 %v439_v49 }
 0x3d6   : > { %v437_v50 = vpop.permute.xlu1 %436  ;;  %v443_v51 = vpop.permute.xlu0 %442 }
 0x3d7   : > { %2376 = vmatprep.subr.mxu0 %v437_v50 }
 0x3d8   : > { %2377 = vmatpush3.msra.mxu0 %v437_v50 }
 0x3d9   : > { %2379 = vmatmul.mubr.msk.f32.vlgmr.msra.gmra.mxu0 %vm245_vm1, %v2858_v1  ;;  %2381 = vmatprep.subr.mxu0 %v2158_v57 }
 0x3da   : > { %2382 = vmatpush3.msra.mxu0 %v2158_v57 }
 0x3db   : > { %2383 = vmatprep.subr.mxu0 %v2157_v59 }
 0x3dc   : > { %2384 = vmatpush3.msra.mxu0 %v2157_v59 }
 0x3dd   : > { %2385 = vmatprep.subr.mxu0 %v2156_v63 }
 0x3de   : > { %2386 = vmatpush3.msra.mxu0 %v2156_v63 }
 0x3df   : > { %2387 = vmatprep.subr.mxu0 %v2155_v7 }
 0x3e0   : > { %2388 = vmatpush3.msra.mxu0 %v2155_v7 }
 0x499   : > { %v2380_v52 = vpop.f32.mrf.mxu0 }
 0x49a   : > { %v517_v53 = vadd.f32 %v2380_v52, %v443_v51 }
 0x49b   : > { %v511_v54 = vpop.f32.mrf.mxu0 }
 0x49c   : > { %2643 = vtanh.f32 %v517_v53  ;;  %v512_v55 = vadd.f32 %v511_v54, %v443_v51 }
 0x49e   : > { %2645 = vtanh.f32 %v512_v55 }
 0x4a9   : > { %v2644_v60 = vpop.eup %2643 }
 0x4aa   : > { %530 = vrot.lane.b32.xlu0 %v2644_v60, %s2781_s14 }
 0x4ab   : > { %v2646_v62 = vpop.eup %2645 }
 0x4ac   : > { %528 = vrot.lane.b32.xlu1 %v2646_v62, %s2781_s14 }
 0x4ae   : > { %642 = vrot.lane.b32.xlu0 %v2737_v3, %s2779_s15 }
 0x4b2   : > { %644 = vrot.lane.b32.xlu0 %v2733_v2, %s2779_s15 }
 0x51c   : > { %v531_v8 = vpop.permute.xlu0 %530 }
 0x51d   : > { %v535_v15 = vmul.f32 %v531_v8, %v525_v11 }
 0x51e   : > { %v529_v10 = vpop.permute.xlu1 %528 }
 0x51f   : > { %v534_v13 = vmul.f32 %v529_v10, %v524_v9  ;;  %v2998_v4 = vadd.f32 %v535_v15, %v523_v17   ;;  %v3070_v15 = vld [vmem:[%s3307_s10 + $0x18] sm:$0xff] (%p45_p0)  ;;  %v3089_v17 = vmov (%p45_p0), 0.0  }
 0x520   : > { %v643_v14 = vpop.permute.xlu0 %642 }
 0x521   : > { %v2991_v5 = vadd.f32 %v534_v13, %v522_v12   ;;  %2400 = vmatprep.mubr.msk.f32.mxu1 %vm70_vm0, %v643_v14  ;;  %v3311_v19 = vmov %v2998_v4  ;;  %v3055_v12 = vld [vmem:[%s3307_s10] sm:$0xff] (%p45_p0)  ;;  %v3060_v13 = vld [vmem:[%s3307_s10 + $0x8] sm:$0xff] (%p45_p0) }
 0x523   : > { %v3310_v16 = vmov %v2991_v5 }
 0x524   : > { %557 = vrot.lane.b32.xlu1 %v3310_v16, %s2779_s15  ;;  %v645_v18 = vpop.permute.xlu0 %644 }
 0x525   : > { %2401 = vmatmul.mubr.msk.f32.vlgmr.msra.gmra.mxu1 %vm70_vm0, %v645_v18 }
 0x526   : > { %2411 = vmatpush3.msra.mxu1 %v2167_v26 }
 0x527   : > { %2412 = vmatprep.subr.mxu1 %v2166_v27 }
 0x528   : > { %559 = vrot.lane.b32.xlu1 %v3311_v19, %s2779_s15  ;;  %2413 = vmatpush3.msra.mxu1 %v2166_v27 }
 0x529   : > { %2414 = vmatprep.subr.mxu1 %v2165_v28 }
 0x52a   : > { %2415 = vmatpush3.msra.mxu1 %v2165_v28 }
 0x52b   : > { %2416 = vmatprep.subr.mxu1 %v2164_v29 }
 0x52c   : > { %2417 = vmatpush3.msra.mxu1 %v2164_v29 }
 0x596   : > { %v558_v20 = vpop.permute.xlu1 %557 }
 0x597   : > { %2389 = vmatprep.mubr.msk.f32.mxu0 %vm70_vm0, %v558_v20 }
 0x59a   : > { %v560_v5 = vpop.permute.xlu1 %559 }
 0x59b   : > { %2390 = vmatmul.mubr.msk.f32.vlgmr.msra.gmra.mxu0 %vm70_vm0, %v560_v5  ;;  %v3315_v5 = vmov %v3310_v16 }
 0x59c   : > { %2407 = vmatprep.mubr.msk.f32.mxu0 %vm245_vm1, %v2853_v0 }
 0x5e5   : > { %v2402_v21 = vpop.f32.mrf.mxu1 }
 0x5e7   : > { %v716_v24 = vpop.f32.mrf.mxu1 }
 0x65b   : > { %v2391_v22 = vpop.f32.mrf.mxu0 }
 0x65c   : > { %v726_v23 = vadd.f32 %v2402_v21, %v2391_v22 }
 0x65d   : > { %v631_v25 = vpop.f32.mrf.mxu0 }
 0x65e   : > { %v725_v4 = vadd.f32 %v716_v24, %v631_v25  ;;  %2403 = vmatprep.subr.mxu0 %v726_v23 }
 0x65f   : > { %2404 = vmatpush3.msra.mxu0 %v726_v23 }
 0x660   : > { %2405 = vmatprep.subr.mxu0 %v725_v4 }
 0x661   : > { %2406 = vmatpush3.msra.mxu0 %v725_v4  ;;  %v3314_v4 = vmov %v3311_v19 }
 0x662   : > { %2408 = vmatmul.mubr.msk.f32.vlgmr.msra.gmra.mxu0 %vm245_vm1, %v2858_v1 }
 0x663   : > { %2425 = vmatprep.mubr.msk.f32.mxu0 %vm245_vm1, %v2853_v0 }
 0x722   : > { %v2409_v31 = vpop.f32.mrf.mxu0 }
 0x723   : > { %v805_v32 = vadd.f32 %v2409_v31, %v2172_v30 }
 0x724   : > { %v799_v33 = vpop.f32.mrf.mxu0 }
 0x725   : > { %v2176_v34 = vmul.f32 -1.442695, %v805_v32  ;;  %v800_v35 = vadd.f32 %v2172_v30, %v799_v33 }
 0x727   : > { %2647 = vpow2.f32 %v2176_v34  ;;  %v2175_v36 = vmul.f32 -1.442695, %v800_v35 }
 0x729   : > { %2649 = vpow2.f32 %v2175_v36 }
 0x734   : > { %v2648_v37 = vpop.eup %2647 }
 0x735   : > { %v815_v38 = vadd.f32 1.0, %v2648_v37 }
 0x736   : > { %v2650_v39 = vpop.eup %2649 }
 0x737   : > { %v814_v40 = vadd.f32 1.0, %v2650_v39  ;;  %2651 = vrcp.f32 %v815_v38 }
 0x739   : > { %2653 = vrcp.f32 %v814_v40 }
 0x744   : > { %v2652_v41 = vpop.eup %2651 }
 0x745   : > { %v823_v44 = vmul.f32 %v2652_v41, %v645_v18  ;;  %v1006_v60 = vsub.f32 1.0, %v2652_v41  ;;  %v1004_v62 = vmul.f32 %v2733_v2, %v2652_v41 }
 0x746   : > { %v2654_v42 = vpop.eup %2653 }
 0x747   : > { %v822_v43 = vmul.f32 %v2654_v42, %v643_v14  ;;  %v1005_v6 = vsub.f32 1.0, %v2654_v42  ;;  %v1003_v9 = vmul.f32 %v2737_v3, %v2654_v42  ;;  %v3065_v14 = vld [vmem:[%s3307_s10 + $0x10] sm:$0xff] (%p45_p0) }
 0x749   : > { %2418 = vmatprep.mubr.msk.f32.mxu1 %vm70_vm0, %v822_v43 }
 0x74a   : > { %2419 = vmatmul.mubr.msk.f32.vlgmr.msra.gmra.mxu1 %vm70_vm0, %v823_v44 }
 0x80a   : > { %v2420_v45 = vpop.f32.mrf.mxu1 }
 0x80b   : > { %909 = vrot.lane.b32.xlu1 %v2420_v45, %s2780_s21 }
 0x80c   : > { %v896_v46 = vpop.f32.mrf.mxu1 }
 0x80d   : > { %907 = vrot.lane.b32.xlu0 %v896_v46, %s2780_s21 }
 0x87d   : > { %v910_v47 = vpop.permute.xlu1 %909 }
 0x87e   : > { %v914_v48 = vadd.f32 %v2391_v22, %v910_v47 }
 0x87f   : > { %v908_v49 = vpop.permute.xlu0 %907 }
 0x880   : > { %v913_v50 = vadd.f32 %v908_v49, %v631_v25  ;;  %919 = vrot.lane.b32.xlu1 %v914_v48, %s2780_s21 }
 0x882   : > { %917 = vrot.lane.b32.xlu0 %v913_v50, %s2780_s21 }
 0x884   : > { %923 = vrot.lane.b32.xlu1 %v2172_v30, %s2780_s21 }
 0x8f2   : > { %v920_v51 = vpop.permute.xlu1 %919 }
 0x8f3   : > { %2421 = vmatprep.subr.mxu0 %v920_v51 }
 0x8f4   : > { %2422 = vmatpush3.msra.mxu0 %v920_v51  ;;  %v918_v52 = vpop.permute.xlu0 %917 }
 0x8f5   : > { %2423 = vmatprep.subr.mxu0 %v918_v52 }
 0x8f6   : > { %2424 = vmatpush3.msra.mxu0 %v918_v52  ;;  %v924_v53 = vpop.permute.xlu1 %923 }
 0x8f7   : > { %2426 = vmatmul.mubr.msk.f32.vlgmr.msra.gmra.mxu0 %vm245_vm1, %v2858_v1 }
 0x9b7   : > { %v2427_v54 = vpop.f32.mrf.mxu0 }
 0x9b8   : > { %v998_v55 = vadd.f32 %v2427_v54, %v924_v53 }
 0x9b9   : > { %v992_v56 = vpop.f32.mrf.mxu0 }
 0x9ba   : > { %2655 = vtanh.f32 %v998_v55  ;;  %v993_v57 = vadd.f32 %v992_v56, %v924_v53 }
 0x9bc   : > { %2657 = vtanh.f32 %v993_v57 }
 0x9c7   : > { %v2656_v58 = vpop.eup %2655 }
 0x9c8   : > { %1011 = vrot.lane.b32.xlu1 %v2656_v58, %s2781_s14 }
 0x9c9   : > { %v2658_v59 = vpop.eup %2657 }
 0x9ca   : > { %1009 = vrot.lane.b32.xlu0 %v2658_v59, %s2781_s14 }
 0xa3a   : > { %v1012_v61 = vpop.permute.xlu1 %1011 }
 0xa3b   : > { %v1016_v63 = vmul.f32 %v1012_v61, %v1006_v60 }
 0xa3c   : > { %v1010_v7 = vpop.permute.xlu0 %1009 }
 0xa3d   : > { %v1018_v8 = vadd.f32 %v1016_v63, %v1004_v62   ;;  %v1015_v10 = vmul.f32 %v1010_v7, %v1005_v6  ;;  %47 = sbr.rel (!%p45_p0) target bundleno = 2 (0x2), region = 92 }
 0xa3f   : > { %v1017_v11 = vadd.f32 %v1015_v10, %v1003_v9   ;;  %v3312_v2 = vmov %v1018_v8 }
 0xa40   :  { %v3075_v2 = vld [vmem:[%s3308_s11] ss:$0 sm:$0xff] (%p45_p0) }
 0xa41   : > { %v3313_v3 = vmov %v1017_v11 }
 0xa42   :  { %v3077_v3 = vmov 0.0  }
 0xa43 LB: > { %v1039_v18 = vld [vmem:[%s3303_s6 + $0x18] sm:$0xff]  ;;  %v1038_v20 = vld [vmem:[%s3303_s6 + $0x10] sm:$0xff]  ;;  %2436 = vmatprep.mubr.msk.f32.mxu0 %vm70_vm0, %v2753_v3  ;;  %s2782_s0 = smov 96   ;;  %v1037_v22 = vld [vmem:[%s3303_s6 + $0x8] sm:$0xff]  ;;  %s2783_s10 = smov 64   ;;  %s2777_s3 = sphi %s3091_s3, %s1029_s3   ;;  %v2773_v17 = vphi %v3089_v17, %v2086_v17   ;;  %v2769_v16 = vphi %v3310_v16, %v3212_v16   ;;  %v2765_v19 = vphi %v3311_v19, %v3219_v19   ;;  %v2761_v11 = vphi %v1017_v11, %v1996_v11   ;;  %v2757_v8 = vphi %v1018_v8, %v1997_v8   ;;  %v2753_v3 = vphi %v3077_v3, %v2081_v3  }
 0xa44   : > { %v1043_v5 = vld [vmem:[%s3304_s7 + $0x18] sm:$0xff]  ;;  %2428 = vmatprep.subr.mxu0 %v1039_v18  ;;  %v1042_v21 = vld [vmem:[%s3304_s7 + $0x10] sm:$0xff]  ;;  %1133 = vrot.lane.b32.xlu0 %v2769_v16, %s2782_s0  ;;  %v1036_v23 = vld [vmem:[%s3303_s6] sm:$0xff]  ;;  %s2784_s13 = smov 32  }
 0xa45   : > { %2439 = vmatprep.subr.mxu1 %v1043_v5  ;;  %2429 = vmatpush3.msra.mxu0 %v1039_v18  ;;  %v1041_v24 = vld [vmem:[%s3304_s7 + $0x8] sm:$0xff]  ;;  %v1040_v25 = vld [vmem:[%s3304_s7] sm:$0xff]  ;;  %v1048_v33 = vld [vmem:[%s3306_s9 + $0x18] sm:$0xff] }
 0xa46   : > { %2430 = vmatprep.subr.mxu0 %v1038_v20  ;;  %2440 = vmatpush3.msra.mxu1 %v1043_v5  ;;  %v1047_v34 = vld [vmem:[%s3306_s9 + $0x10] sm:$0xff]  ;;  %v1046_v35 = vld [vmem:[%s3306_s9 + $0x8] sm:$0xff]  ;;  %v1045_v36 = vld [vmem:[%s3306_s9] sm:$0xff] }
 0xa47   : > { %2431 = vmatpush3.msra.mxu0 %v1038_v20  ;;  %2441 = vmatprep.subr.mxu1 %v1042_v21  ;;  %v2185_v37 = vld [vmem:[%s3305_s8] ss:$0 sm:$0xff]  ;;  %v2201_v7 = vld [vmem:[%s3304_s7 + $0x38] sm:$0xff]  ;;  %v2200_v10 = vld [vmem:[%s3304_s7 + $0x30] sm:$0xff] }
 0xa48   : > { %2432 = vmatprep.subr.mxu0 %v1037_v22  ;;  %2442 = vmatpush3.msra.mxu1 %v1042_v21  ;;  %v2197_v9 = vld [vmem:[%s3303_s6 + $0x38] sm:$0xff]  ;;  %v2196_v3 = vld [vmem:[%s3303_s6 + $0x30] sm:$0xff]  ;;  %v2199_v18 = vld [vmem:[%s3304_s7 + $0x28] sm:$0xff] }
 0xa49   : > { %1135 = vrot.lane.b32.xlu0 %v2765_v19, %s2782_s0  ;;  %2433 = vmatpush3.msra.mxu0 %v1037_v22  ;;  %v2195_v5 = vld [vmem:[%s3303_s6 + $0x28] sm:$0xff]  ;;  %v2198_v21 = vld [vmem:[%s3304_s7 + $0x20] sm:$0xff] }
 0xa4a   : > { %2434 = vmatprep.subr.mxu0 %v1036_v23  ;;  %2443 = vmatprep.subr.mxu1 %v1041_v24  ;;  %v2194_v22 = vld [vmem:[%s3303_s6 + $0x20] sm:$0xff] }
 0xa4b   : > { %2435 = vmatpush3.msra.mxu0 %v1036_v23  ;;  %2444 = vmatpush3.msra.mxu1 %v1041_v24 }
 0xa4c   : > { %2437 = vmatmul.mubr.msk.f32.vlgmr.msra.gmra.mxu0 %vm70_vm0, %v2773_v17  ;;  %2445 = vmatprep.subr.mxu1 %v1040_v25 }
 0xa4d   : > { %2446 = vmatpush3.msra.mxu1 %v1040_v25  ;;  %2472 = vmatprep.mubr.msk.f32.mxu0 %vm245_vm1, %v2853_v0 }
 0xab6   : > { %v1134_v4 = vpop.permute.xlu0 %1133 }
 0xab7   : > { %2447 = vmatprep.mubr.msk.f32.mxu1 %vm70_vm0, %v1134_v4 }
 0xabb   : > { %v1136_v26 = vpop.permute.xlu0 %1135 }
 0xabc   : > { %2448 = vmatmul.mubr.msk.f32.vlgmr.msra.gmra.mxu1 %vm70_vm0, %v1136_v26 }
 0xabd   : > { %2454 = vmatprep.mubr.msk.f32.mxu1 %vm245_vm1, %v2853_v0 }
 0xb0c   : > { %v2438_v27 = vpop.f32.mrf.mxu0 }
 0xb0e   : > { %v1122_v30 = vpop.f32.mrf.mxu0 }
 0xb7c   : > { %v2449_v28 = vpop.f32.mrf.mxu1 }
 0xb7d   : > { %v1217_v29 = vadd.f32 %v2449_v28, %v2438_v27 }
 0xb7e   : > { %v1207_v31 = vpop.f32.mrf.mxu1 }
 0xb7f   : > { %v1216_v32 = vadd.f32 %v1207_v31, %v1122_v30  ;;  %2450 = vmatprep.subr.mxu1 %v1217_v29 }
 0xb80   : > { %2451 = vmatpush3.msra.mxu1 %v1217_v29 }
 0xb81   : > { %2452 = vmatprep.subr.mxu1 %v1216_v32 }
 0xb82   : > { %2453 = vmatpush3.msra.mxu1 %v1216_v32 }
 0xb83   : > { %2455 = vmatmul.mubr.msk.f32.vlgmr.msra.gmra.mxu1 %vm245_vm1, %v2858_v1  ;;  %2457 = vmatprep.subr.mxu1 %v1048_v33 }
 0xb84   : > { %2458 = vmatpush3.msra.mxu1 %v1048_v33 }
 0xb85   : > { %2459 = vmatprep.subr.mxu1 %v1047_v34 }
 0xb86   : > { %2460 = vmatpush3.msra.mxu1 %v1047_v34 }
 0xb87   : > { %2461 = vmatprep.subr.mxu1 %v1046_v35 }
 0xb88   : > { %2462 = vmatpush3.msra.mxu1 %v1046_v35 }
 0xb89   : > { %2463 = vmatprep.subr.mxu1 %v1045_v36 }
 0xb8a   : > { %2464 = vmatpush3.msra.mxu1 %v1045_v36 }
 0xb8b   : > { %2486 = vmatprep.subr.mxu1 %v2201_v7 }
 0xc43   : > { %v2456_v38 = vpop.f32.mrf.mxu1 }
 0xc44   : > { %v1303_v39 = vadd.f32 %v2456_v38, %v2185_v37 }
 0xc45   : > { %v1297_v40 = vpop.f32.mrf.mxu1 }
 0xc46   : > { %v2189_v41 = vmul.f32 -1.442695, %v1303_v39  ;;  %v1298_v42 = vadd.f32 %v2185_v37, %v1297_v40  ;;  %v2206_v40 = vld [vmem:[%s3306_s9 + $0x38] sm:$0xff] }
 0xc48   : > { %2659 = vpow2.f32 %v2189_v41  ;;  %v2188_v43 = vmul.f32 -1.442695, %v1298_v42  ;;  %v2205_v41 = vld [vmem:[%s3306_s9 + $0x30] sm:$0xff]  ;;  %v2204_v42 = vld [vmem:[%s3306_s9 + $0x28] sm:$0xff] }
 0xc4a   : > { %2661 = vpow2.f32 %v2188_v43  ;;  %v2203_v43 = vld [vmem:[%s3306_s9 + $0x20] sm:$0xff] }
 0xc55   : > { %v2660_v44 = vpop.eup %2659 }
 0xc56   : > { %v1313_v45 = vadd.f32 1.0, %v2660_v44  ;;  %v2211_v44 = vld [vmem:[%s3305_s8 + $0x1] ss:$0 sm:$0xff] }
 0xc57   : > { %v2662_v46 = vpop.eup %2661 }
 0xc58   : > { %v1312_v47 = vadd.f32 1.0, %v2662_v46  ;;  %2663 = vrcp.f32 %v1313_v45 }
 0xc5a   : > { %2665 = vrcp.f32 %v1312_v47 }
 0xc65   : > { %v3163_v48 = vpop.eup %2663 }
 0xc66   : > { %v1321_v51 = vmul.f32 %v3163_v48, %v1136_v26 }
 0xc67   : > { %v3165_v49 = vpop.eup %2665 }
 0xc68   : > { %v1320_v50 = vmul.f32 %v3165_v49, %v1134_v4  ;;  %v1503_v24 = vsub.f32 1.0, %v3165_v49  ;;  %v1504_v4 = vsub.f32 1.0, %v3163_v48  ;;  %v1501_v26 = vmul.f32 %v2769_v16, %v3165_v49 }
 0xc6a   : > { %2465 = vmatprep.mubr.msk.f32.mxu1 %vm70_vm0, %v1320_v50 }
 0xc6b   : > { %2466 = vmatmul.mubr.msk.f32.vlgmr.msra.gmra.mxu1 %vm70_vm0, %v1321_v51 }
 0xc6c   : > { %2487 = vmatpush3.msra.mxu1 %v2201_v7 }
 0xc6d   : > { %2488 = vmatprep.subr.mxu1 %v2200_v10 }
 0xc6e   : > { %2489 = vmatpush3.msra.mxu1 %v2200_v10 }
 0xc6f   : > { %2490 = vmatprep.subr.mxu1 %v2199_v18 }
 0xc70   : > { %2491 = vmatpush3.msra.mxu1 %v2199_v18 }
 0xc71   : > { %2492 = vmatprep.subr.mxu1 %v2198_v21 }
 0xc72   : > { %2493 = vmatpush3.msra.mxu1 %v2198_v21 }
 0xc73   : > { %2504 = vmatprep.subr.mxu1 %v2206_v40 }
 0xd2b   : > { %v2467_v52 = vpop.f32.mrf.mxu1 }
 0xd2c   : > { %1407 = vrot.lane.b32.xlu1 %v2467_v52, %s2783_s10 }
 0xd2d   : > { %v1394_v53 = vpop.f32.mrf.mxu1 }
 0xd30   : > { %1405 = vrot.lane.b32.xlu1 %v1394_v53, %s2783_s10 }
 0xd9e   : > { %v1408_v54 = vpop.permute.xlu1 %1407 }
 0xd9f   : > { %v1412_v55 = vadd.f32 %v2438_v27, %v1408_v54 }
 0xda1   : > { %1417 = vrot.lane.b32.xlu0 %v1412_v55, %s2783_s10 }
 0xda2   : > { %v1406_v56 = vpop.permute.xlu1 %1405 }
 0xda3   : > { %v1411_v57 = vadd.f32 %v1406_v56, %v1122_v30  ;;  %v1502_v30 = vmul.f32 %v2765_v19, %v3163_v48 }
 0xda5   : > { %1415 = vrot.lane.b32.xlu1 %v1411_v57, %s2783_s10  ;;  %1421 = vrot.lane.b32.xlu0 %v2185_v37, %s2783_s10 }
 0xe13   : > { %v1418_v58 = vpop.permute.xlu0 %1417 }
 0xe14   : > { %2468 = vmatprep.subr.mxu0 %v1418_v58 }
 0xe15   : > { %2469 = vmatpush3.msra.mxu0 %v1418_v58 }
 0xe17   : > { %v1416_v59 = vpop.permute.xlu1 %1415  ;;  %v1422_v60 = vpop.permute.xlu0 %1421 }
 0xe18   : > { %2470 = vmatprep.subr.mxu0 %v1416_v59 }
 0xe19   : > { %2471 = vmatpush3.msra.mxu0 %v1416_v59 }
 0xe1a   : > { %2473 = vmatmul.mubr.msk.f32.vlgmr.msra.gmra.mxu0 %vm245_vm1, %v2858_v1  ;;  %2475 = vmatprep.subr.mxu0 %v2197_v9 }
 0xe1b   : > { %2476 = vmatpush3.msra.mxu0 %v2197_v9 }
 0xe1c   : > { %2477 = vmatprep.subr.mxu0 %v2196_v3 }
 0xe1d   : > { %2478 = vmatpush3.msra.mxu0 %v2196_v3 }
 0xe1e   : > { %2479 = vmatprep.subr.mxu0 %v2195_v5 }
 0xe1f   : > { %2480 = vmatpush3.msra.mxu0 %v2195_v5 }
 0xe20   : > { %2481 = vmatprep.subr.mxu0 %v2194_v22 }
 0xe21   : > { %2482 = vmatpush3.msra.mxu0 %v2194_v22 }
 0xeda   : > { %v2474_v61 = vpop.f32.mrf.mxu0 }
 0xedb   : > { %v1496_v62 = vadd.f32 %v2474_v61, %v1422_v60 }
 0xedc   : > { %v1490_v63 = vpop.f32.mrf.mxu0 }
 0xedd   : > { %2667 = vtanh.f32 %v1496_v62  ;;  %v1491_v6 = vadd.f32 %v1490_v63, %v1422_v60 }
 0xedf   : > { %2669 = vtanh.f32 %v1491_v6 }
 0xeea   : > { %v2668_v17 = vpop.eup %2667 }
 0xeeb   : > { %1509 = vrot.lane.b32.xlu0 %v2668_v17, %s2784_s13 }
 0xeec   : > { %v2670_v20 = vpop.eup %2669 }
 0xeed   : > { %1507 = vrot.lane.b32.xlu1 %v2670_v20, %s2784_s13 }
 0xeef   : > { %1621 = vrot.lane.b32.xlu0 %v2761_v11, %s2782_s0 }
 0xef3   : > { %1623 = vrot.lane.b32.xlu0 %v2757_v8, %s2782_s0 }
 0xf5d   : > { %v1510_v23 = vpop.permute.xlu0 %1509 }
 0xf5e   : > { %v1514_v29 = vmul.f32 %v1510_v23, %v1504_v4 }
 0xf5f   : > { %v1508_v25 = vpop.permute.xlu1 %1507 }
 0xf60   : > { %v1513_v27 = vmul.f32 %v1508_v25, %v1503_v24  ;;  %v3219_v19 = vadd.f32 %v1514_v29, %v1502_v30  }
 0xf61   : > { %v1622_v28 = vpop.permute.xlu0 %1621 }
 0xf62   : > { %v3212_v16 = vadd.f32 %v1513_v27, %v1501_v26   ;;  %2494 = vmatprep.mubr.msk.f32.mxu1 %vm70_vm0, %v1622_v28 }
 0xf64   : > { %1536 = vrot.lane.b32.xlu1 %v3212_v16, %s2782_s0 }
 0xf65   : > { %v1624_v31 = vpop.permute.xlu0 %1623 }
 0xf66   : > { %2495 = vmatmul.mubr.msk.f32.vlgmr.msra.gmra.mxu1 %vm70_vm0, %v1624_v31 }
 0xf67   : > { %2505 = vmatpush3.msra.mxu1 %v2206_v40 }
 0xf68   : > { %1538 = vrot.lane.b32.xlu1 %v3219_v19, %s2782_s0  ;;  %2506 = vmatprep.subr.mxu1 %v2205_v41 }
 0xf69   : > { %2507 = vmatpush3.msra.mxu1 %v2205_v41 }
 0xf6a   : > { %2508 = vmatprep.subr.mxu1 %v2204_v42 }
 0xf6b   : > { %2509 = vmatpush3.msra.mxu1 %v2204_v42 }
 0xf6c   : > { %2510 = vmatprep.subr.mxu1 %v2203_v43 }
 0xf6d   : > { %2511 = vmatpush3.msra.mxu1 %v2203_v43 }
 0xfd6   : > { %v1537_v32 = vpop.permute.xlu1 %1536 }
 0xfd7   : > { %2483 = vmatprep.mubr.msk.f32.mxu0 %vm70_vm0, %v1537_v32 }
 0xfda   : > { %v1539_v33 = vpop.permute.xlu1 %1538 }
 0xfdb   : > { %2484 = vmatmul.mubr.msk.f32.vlgmr.msra.gmra.mxu0 %vm70_vm0, %v1539_v33 }
 0xfdc   : > { %2501 = vmatprep.mubr.msk.f32.mxu0 %vm245_vm1, %v2853_v0 }
0x1026   : > { %v2496_v34 = vpop.f32.mrf.mxu1 }
0x1028   : > { %v1695_v37 = vpop.f32.mrf.mxu1 }
0x109b   : > { %v2485_v35 = vpop.f32.mrf.mxu0 }
0x109c   : > { %v1705_v36 = vadd.f32 %v2496_v34, %v2485_v35 }
0x109d   : > { %v1610_v38 = vpop.f32.mrf.mxu0 }
0x109e   : > { %v1704_v39 = vadd.f32 %v1695_v37, %v1610_v38  ;;  %2497 = vmatprep.subr.mxu0 %v1705_v36 }
0x109f   : > { %2498 = vmatpush3.msra.mxu0 %v1705_v36 }
0x10a0   : > { %2499 = vmatprep.subr.mxu0 %v1704_v39 }
0x10a1   : > { %2500 = vmatpush3.msra.mxu0 %v1704_v39 }
0x10a2   : > { %2502 = vmatmul.mubr.msk.f32.vlgmr.msra.gmra.mxu0 %vm245_vm1, %v2858_v1 }
0x10a3   : > { %2519 = vmatprep.mubr.msk.f32.mxu0 %vm245_vm1, %v2853_v0 }
0x1162   : > { %v2503_v45 = vpop.f32.mrf.mxu0 }
0x1163   : > { %v1784_v46 = vadd.f32 %v2503_v45, %v2211_v44 }
0x1164   : > { %v1778_v47 = vpop.f32.mrf.mxu0 }
0x1165   : > { %v2215_v48 = vmul.f32 -1.442695, %v1784_v46  ;;  %v1779_v49 = vadd.f32 %v2211_v44, %v1778_v47 }
0x1167   : > { %2671 = vpow2.f32 %v2215_v48  ;;  %v2214_v50 = vmul.f32 -1.442695, %v1779_v49 }
0x1169   : > { %2673 = vpow2.f32 %v2214_v50 }
0x1174   : > { %v2672_v51 = vpop.eup %2671 }
0x1175   : > { %v1794_v52 = vadd.f32 1.0, %v2672_v51 }
0x1176   : > { %v2674_v53 = vpop.eup %2673 }
0x1177   : > { %v1793_v54 = vadd.f32 1.0, %v2674_v53  ;;  %2675 = vrcp.f32 %v1794_v52 }
0x1179   : > { %2677 = vrcp.f32 %v1793_v54 }
0x1184   : > { %v2676_v55 = vpop.eup %2675 }
0x1185   : > { %v1802_v58 = vmul.f32 %v2676_v55, %v1624_v31  ;;  %v1985_v22 = vsub.f32 1.0, %v2676_v55  ;;  %v1983_v24 = vmul.f32 %v2757_v8, %v2676_v55 }
0x1186   : > { %v2678_v56 = vpop.eup %2677 }
0x1187   : > { %v1801_v57 = vmul.f32 %v2678_v56, %v1622_v28  ;;  %v1984_v4 = vsub.f32 1.0, %v2678_v56  ;;  %v1982_v27 = vmul.f32 %v2761_v11, %v2678_v56 }
0x1189   : > { %2512 = vmatprep.mubr.msk.f32.mxu1 %vm70_vm0, %v1801_v57 }
0x118a   : > { %2513 = vmatmul.mubr.msk.f32.vlgmr.msra.gmra.mxu1 %vm70_vm0, %v1802_v58 }
0x124a   : > { %v2514_v59 = vpop.f32.mrf.mxu1 }
0x124b   : > { %1888 = vrot.lane.b32.xlu1 %v2514_v59, %s2783_s10 }
0x124c   : > { %v1875_v60 = vpop.f32.mrf.mxu1 }
0x124d   : > { %1886 = vrot.lane.b32.xlu0 %v1875_v60, %s2783_s10 }
0x12bd   : > { %v1889_v61 = vpop.permute.xlu1 %1888 }
0x12be   : > { %v1893_v62 = vadd.f32 %v2485_v35, %v1889_v61 }
0x12bf   : > { %v1887_v63 = vpop.permute.xlu0 %1886 }
0x12c0   : > { %v1892_v6 = vadd.f32 %v1887_v63, %v1610_v38  ;;  %1898 = vrot.lane.b32.xlu1 %v1893_v62, %s2783_s10 }
0x12c2   : > { %1896 = vrot.lane.b32.xlu0 %v1892_v6, %s2783_s10 }
0x12c4   : > { %1902 = vrot.lane.b32.xlu1 %v2211_v44, %s2783_s10  ;;  %s2223_s10 = sshll.u32 %s2777_s3, 4  ;;  %s1029_s3 = sadd.s32 1, %s2777_s3  }
0x12c5   : > { %s2090_s27 = scalar_lea.vmem %s3309_s12, %s2223_s10  ;;  %p1026_p1 = scmp.ge.s32.totalorder %s1029_s3, 8  }
0x1332   : > { %v1899_v7 = vpop.permute.xlu1 %1898 }
0x1333   : > { %2515 = vmatprep.subr.mxu0 %v1899_v7 }
0x1334   : > { %2516 = vmatpush3.msra.mxu0 %v1899_v7  ;;  %v1897_v9 = vpop.permute.xlu0 %1896 }
0x1335   : > { %2517 = vmatprep.subr.mxu0 %v1897_v9 }
0x1336   : > { %2518 = vmatpush3.msra.mxu0 %v1897_v9  ;;  %v1903_v10 = vpop.permute.xlu1 %1902 }
0x1337   : > { %2520 = vmatmul.mubr.msk.f32.vlgmr.msra.gmra.mxu0 %vm245_vm1, %v2858_v1  ;;  %2522 = vmatprep.subr.mxu0 %v3070_v15 }
0x1338   : > { %2523 = vmatpush3.msra.mxu0 %v3070_v15 }
0x1339   : > { %2524 = vmatprep.subr.mxu0 %v3065_v14 }
0x133a   : > { %2525 = vmatpush3.msra.mxu0 %v3065_v14 }
0x133b   : > { %2526 = vmatprep.subr.mxu0 %v3060_v13 }
0x133c   : > { %2527 = vmatpush3.msra.mxu0 %v3060_v13 }
0x133d   : > { %2528 = vmatprep.subr.mxu0 %v3055_v12 }
0x133e   : > { %2529 = vmatpush3.msra.mxu0 %v3055_v12 }
0x13f7   : > { %v2521_v3 = vpop.f32.mrf.mxu0 }
0x13f8   : > { %v1977_v17 = vadd.f32 %v2521_v3, %v1903_v10 }
0x13f9   : > { %v1971_v18 = vpop.f32.mrf.mxu0 }
0x13fa   : > { %2679 = vtanh.f32 %v1977_v17  ;;  %v1972_v20 = vadd.f32 %v1971_v18, %v1903_v10 }
0x13fc   : > { %2681 = vtanh.f32 %v1972_v20 }
0x1407   : > { %v2680_v5 = vpop.eup %2679 }
0x1408   : > { %1990 = vrot.lane.b32.xlu1 %v2680_v5, %s2784_s13 }
0x1409   : > { %v2682_v21 = vpop.eup %2681 }
0x140a   : > { %1988 = vrot.lane.b32.xlu0 %v2682_v21, %s2784_s13 }
0x147a   : > { %v1991_v23 = vpop.permute.xlu1 %1990 }
0x147b   : > { %v1995_v25 = vmul.f32 %v1991_v23, %v1985_v22 }
0x147c   : > { %v1989_v26 = vpop.permute.xlu0 %1988 }
0x147d   : > { %v1997_v8 = vadd.f32 %v1995_v25, %v1983_v24   ;;  %v1994_v28 = vmul.f32 %v1989_v26, %v1984_v4 }
0x147f   : > { %v1996_v11 = vadd.f32 %v1994_v28, %v1982_v27   ;;  %2008 = vrot.lane.b32.xlu1 %v1997_v8, %s2782_s0 }
0x1481   : > { %2006 = vrot.lane.b32.xlu0 %v1996_v11, %s2782_s0 }
0x14f1   : > { %v2009_v30 = vpop.permute.xlu1 %2008 }
0x14f3   : > { %v2007_v29 = vpop.permute.xlu0 %2006 }
0x14f4   : > { %2530 = vmatprep.mubr.msk.f32.mxu0 %vm70_vm0, %v2007_v29 }
0x14f5   : > { %2531 = vmatmul.mubr.msk.f32.vlgmr.msra.gmra.mxu0 %vm70_vm0, %v2009_v30 }
0x15b5   : > { %v2532_v31 = vpop.f32.mrf.mxu0 }
0x15b6   : > { %v2086_v17 = vadd.f32 %v2532_v31, %v3075_v2   ;;  %1028 = sbr.rel (!%p1026_p1) target bundleno = 2627 (0xa43), region = 103 }
0x15b7   : > { %v2080_v32 = vpop.f32.mrf.mxu0 }
0x15b8   : > { %2092 = vst.msk [vmem:[%s2090_s27 + $0x8] sm:$0xff] %vm70_vm0, %v2086_v17  ;;  %v2081_v3 = vadd.f32 %v3075_v2, %v2080_v32  }
0x15ba   : > { %2091 = vst.msk [vmem:[%s2090_s27] sm:$0xff] %vm70_vm0, %v2081_v3 }

</bundles_post_ra>
